<compile_context>
chip_gen: v6e
topology: v6e:2x2x1
jax: 0.10.0
libtpu: 0.0.40
codegen_flags: <defaults>
</compile_context>

<pallas_src>
import functools

import jax
import jax.numpy as jnp
from jax.experimental import pallas as pl
from jax.experimental.pallas import tpu as pltpu


def _round_up(x, m):
    return ((x + m - 1) // m) * m


def _patchify_linear_kernel(x_ref, w_ref, b_ref, o_ref):
    # x_ref: (TM, K)   tile of flattened patches
    # w_ref: (K, Np)   VMEM-resident weight (already (in, out), lane-padded)
    # b_ref: (1, Np)   VMEM-resident bias (f32)
    # o_ref: (TM, Np)
    acc = jnp.dot(x_ref[...], w_ref[...], preferred_element_type=jnp.float32)
    acc = acc + b_ref[...].astype(jnp.float32)  # broadcast (1, Np) over (TM, Np)
    o_ref[...] = acc.astype(o_ref.dtype)


def _choose_tile_m(m_rows, k, n_pad, in_itemsize, out_itemsize,
                   budget_bytes=24 * 1024 * 1024):
    """Largest row-tile (multiple of 8, <=512) whose working set fits the budget."""
    tm = min(512, _round_up(m_rows, 8))
    tm = _round_up(tm, 8)
    while tm > 8:
        need = (2 * tm * k * in_itemsize          # double-buffered x tiles
                + 2 * tm * n_pad * out_itemsize   # double-buffered out tiles
                + 2 * k * n_pad * in_itemsize     # resident weight buffers
                + 2 * n_pad * 4)                  # bias
        if need <= budget_bytes:
            break
        tm = max(8, _round_up(tm // 2, 8))
    return tm


def patchify_linear_pallas(patches, weight_t, bias, out_dtype):
    """patches: (M, K); weight_t: (K, N); bias: (N,) f32  ->  (M, N) out_dtype."""
    M, K = patches.shape
    Kw, N = weight_t.shape
    assert Kw == K

    # Lane-dense output: pad N (embedding dim) to a multiple of 128 so the
    # store path uses unmasked vst instead of masked partial stores.
    n_pad = _round_up(N, 128)
    if n_pad != N:
        weight_t = jnp.pad(weight_t, ((0, 0), (0, n_pad - N)))
        bias = jnp.pad(bias, (0, n_pad - N))
    bias2d = bias.reshape(1, n_pad).astype(jnp.float32)

    out_itemsize = jnp.dtype(out_dtype).itemsize
    tm = _choose_tile_m(M, K, n_pad, patches.dtype.itemsize, out_itemsize)

    # Pad M up to a multiple of the tile so every block is full / aligned.
    m_pad = _round_up(M, tm)
    if m_pad != M:
        patches = jnp.pad(patches, ((0, m_pad - M), (0, 0)))

    grid = (m_pad // tm,)

    out = pl.pallas_call(
        _patchify_linear_kernel,
        out_shape=jax.ShapeDtypeStruct((m_pad, n_pad), out_dtype),
        grid_spec=pltpu.PrefetchScalarGridSpec(
            num_scalar_prefetch=0,
            grid=grid,
            in_specs=[
                pl.BlockSpec((tm, K), lambda i: (i, 0)),      # streamed x tiles
                pl.BlockSpec((K, n_pad), lambda i: (0, 0)),   # resident weight
                pl.BlockSpec((1, n_pad), lambda i: (0, 0)),   # resident bias
            ],
            out_specs=pl.BlockSpec((tm, n_pad), lambda i: (i, 0)),
        ),
        compiler_params=pltpu.CompilerParams(
            dimension_semantics=("parallel",),        # independent M tiles
            vmem_limit_bytes=32 * 1024 * 1024,        # safe on v5e/v6e/v7x
            allow_input_fusion=[True, False, False],  # fuse patchify into x DMA
        ),
    )(patches, weight_t, bias2d)

    # Drop row / lane padding (no-op when nothing was padded).
    return out[:M, :N]


def linear_patchification(x, weight, bias, patch_size, compute_dtype=None):
    """Forward pass of Linear_Patchification.

    x:      (b, c, H, W)  NCHW, like PyTorch
    weight: (embedding_dim, patch_dim)  PyTorch nn.Linear weight convention
    bias:   (embedding_dim,)
    compute_dtype: optional (e.g. jnp.bfloat16) to halve HBM traffic for the
                   matmul inputs; accumulation and bias add stay in f32.
    Returns (b, num_patches, embedding_dim).
    """
    b, c, H, W = x.shape
    s1, s2 = patch_size
    h, w = H // s1, W // s2
    out_dtype = x.dtype

    # Same reshape/permute chain as the PyTorch module (layout glue; fused
    # into the kernel's input DMA via allow_input_fusion).
    xp = x.reshape(b, c, h, s1, w, s2)
    xp = jnp.transpose(xp, (0, 2, 4, 3, 5, 1))        # (b, h, w, s1, s2, c)
    xp = xp.reshape(b * h * w, s1 * s2 * c)           # (M, patch_dim)

    weight_t = weight.T                               # (patch_dim, E), tiny
    bias_f32 = bias.astype(jnp.float32)
    if compute_dtype is not None:
        xp = xp.astype(compute_dtype)
        weight_t = weight_t.astype(compute_dtype)

    E = weight.shape[0]
    out = patchify_linear_pallas(xp, weight_t, bias_f32, out_dtype)  # (M, E)
    return out.reshape(b, h * w, E)


if __name__ == "__main__":
    # Small shapes consistent with the module.
    batch, channels, H, W = 2, 4, 16, 16
    patch_size = (4, 4)
    embedding_dim = 32
    patch_dim = patch_size[0] * patch_size[1] * channels  # 64

    key = jax.random.PRNGKey(0)
    kx, kw, kb = jax.random.split(key, 3)

    x = jax.random.normal(kx, (batch, channels, H, W), dtype=jnp.float32)
    bound = 1.0 / (patch_dim ** 0.5)
    weight = jax.random.uniform(kw, (embedding_dim, patch_dim),
                                minval=-bound, maxval=bound, dtype=jnp.float32)
    bias = jax.random.uniform(kb, (embedding_dim,),
                              minval=-bound, maxval=bound, dtype=jnp.float32)

    # f32 path.
    fwd = jax.jit(functools.partial(linear_patchification, patch_size=patch_size))
    out = jax.block_until_ready(fwd(x, weight, bias))

    # Reference in plain JAX (same semantics as the PyTorch module).
    h, w = H // patch_size[0], W // patch_size[1]
    xp = x.reshape(batch, channels, h, patch_size[0], w, patch_size[1])
    xp = jnp.transpose(xp, (0, 2, 4, 3, 5, 1)).reshape(batch, h * w, patch_dim)
    ref = xp @ weight.T + bias

    assert out.shape == (batch, h * w, embedding_dim)
    assert jnp.allclose(out, ref, atol=1e-5, rtol=1e-5)

    # bf16 compute path (halves HBM traffic for x / weight; f32 accumulate).
    fwd_bf16 = jax.jit(functools.partial(linear_patchification,
                                         patch_size=patch_size,
                                         compute_dtype=jnp.bfloat16))
    out_bf16 = jax.block_until_ready(fwd_bf16(x, weight, bias))
    assert out_bf16.shape == ref.shape
    assert jnp.allclose(out_bf16, ref, atol=5e-2, rtol=5e-2)

    print("KERNEL_OK")
</pallas_src>

<mosaic_0001>
module attributes {stable_mosaic.version = 11 : i64} {
  func.func @_patchify_linear_kernel(%arg0: i32, %arg1: memref<32x64xf32, #tpu.memory_space<vmem>>, %arg2: memref<64x128xf32, #tpu.memory_space<vmem>>, %arg3: memref<1x128xf32, #tpu.memory_space<vmem>>, %arg4: memref<32x128xf32, #tpu.memory_space<vmem>>) attributes {dimension_semantics = [#tpu.dimension_semantics<parallel>], iteration_bounds = array<i64: 1>, scalar_prefetch = 0 : i64, scratch_operands = 0 : i64, tpu.core_type = #tpu.core_type<tc>, window_params = [{transform_indices = @transform_0, window_bounds = array<i64: 32, 64>}, {pipeline_mode = #tpu.pipeline_mode<synchronous>, transform_indices = @transform_1, window_bounds = array<i64: 64, 128>}, {pipeline_mode = #tpu.pipeline_mode<synchronous>, transform_indices = @transform_2, window_bounds = array<i64: 1, 128>}, {transform_indices = @transform_3, window_bounds = array<i64: 32, 128>}]} {
    %c0 = arith.constant 0 : index
    %c0_0 = arith.constant 0 : index
    %0 = vector.load %arg1[%c0, %c0_0] : memref<32x64xf32, #tpu.memory_space<vmem>>, vector<32x64xf32>
    %c0_1 = arith.constant 0 : index
    %c0_2 = arith.constant 0 : index
    %1 = vector.load %arg2[%c0_1, %c0_2] : memref<64x128xf32, #tpu.memory_space<vmem>>, vector<64x128xf32>
    %cst = arith.constant dense<0.000000e+00> : vector<32x128xf32>
    %2 = tpu.matmul %0, %1, %cst {dimension_numbers = #tpu.dot_dimension_numbers<[1], [0], [0], [1], [0, 0, 1, 1], [], []>} : vector<32x64xf32>, vector<64x128xf32>, vector<32x128xf32> -> vector<32x128xf32>
    %c0_3 = arith.constant 0 : index
    %c0_4 = arith.constant 0 : index
    %3 = vector.load %arg3[%c0_3, %c0_4] : memref<1x128xf32, #tpu.memory_space<vmem>>, vector<1x128xf32>
    %4 = vector.broadcast %3 : vector<1x128xf32> to vector<32x128xf32>
    %5 = arith.addf %2, %4 : vector<32x128xf32>
    %c0_5 = arith.constant 0 : index
    %c0_6 = arith.constant 0 : index
    %6 = vector.load %arg4[%c0_5, %c0_6] : memref<32x128xf32, #tpu.memory_space<vmem>>, vector<32x128xf32>
    tpu.vector_store %arg4[%c0_5, %c0_6], %5 {strides = array<i32>} : memref<32x128xf32, #tpu.memory_space<vmem>>, vector<32x128xf32>,
    return
  }
  func.func @transform_0(%arg0: i32) -> (i32, i32) {
    %c0_i32 = arith.constant 0 : i32
    %c0_i32_0 = arith.constant 0 : i32
    return %arg0, %c0_i32 : i32, i32
  }
  func.func @transform_1(%arg0: i32) -> (i32, i32) {
    %c0_i32 = arith.constant 0 : i32
    %c0_i32_0 = arith.constant 0 : i32
    %c0_i32_1 = arith.constant 0 : i32
    return %c0_i32, %c0_i32_0 : i32, i32
  }
  func.func @transform_2(%arg0: i32) -> (i32, i32) {
    %c0_i32 = arith.constant 0 : i32
    %c0_i32_0 = arith.constant 0 : i32
    %c0_i32_1 = arith.constant 0 : i32
    return %c0_i32, %c0_i32_0 : i32, i32
  }
  func.func @transform_3(%arg0: i32) -> (i32, i32) {
    %c0_i32 = arith.constant 0 : i32
    %c0_i32_0 = arith.constant 0 : i32
    return %arg0, %c0_i32 : i32, i32
  }
}

</mosaic_0001>

<bundles_post_ra>
// kernel: linear_patchification.1
= control target key start
LH: loop header
LB: loop body
LE: loop exit
PB: predicated region body
PF: predicated region fallthrough
CT: control target
= control target key end

     0   :  { %s297_s0 = inlined_call_operand.vmem [shape: f32[32,64], index: 0, kind: input, shape index: {}]   ;;  %s298_s1 = inlined_call_operand.vmem [shape: f32[64,128], index: 1, kind: input, shape index: {}]   ;;  %s299_s2 = inlined_call_operand.vmem [shape: f32[1,128], index: 2, kind: input, shape index: {}]   ;;  %s300_s3 = inlined_call_operand.hbm [shape: f32[32,128], index: 3, kind: output, shape index: {}]  }
   0x1   :  { %v26_v0 = vld [vmem:[%s298_s1 + $0x38] sm:$0xff]  ;;  %v25_v1 = vld [vmem:[%s298_s1 + $0x30] sm:$0xff]  ;;  %v24_v2 = vld [vmem:[%s298_s1 + $0x28] sm:$0xff] }
   0x2   :  { %169 = vmatprep.subr.mxu0 %v26_v0  ;;  %191 = vmatprep.subr.mxu1 %v26_v0  ;;  %v23_v3 = vld [vmem:[%s298_s1 + $0x20] sm:$0xff] }
   0x3   :  { %170 = vmatpush3.msra.mxu0 %v26_v0  ;;  %199 = vmatpush3.msra.mxu1 %v26_v0 }
   0x4   :  { %171 = vmatprep.subr.mxu0 %v25_v1  ;;  %192 = vmatprep.subr.mxu1 %v25_v1 }
   0x5   :  { %172 = vmatpush3.msra.mxu0 %v25_v1  ;;  %200 = vmatpush3.msra.mxu1 %v25_v1 }
   0x6   :  { %8 = vsyncpa [#allocation3], 0  ;;  %173 = vmatprep.subr.mxu0 %v24_v2  ;;  %193 = vmatprep.subr.mxu1 %v24_v2  ;;  %v22_v4 = vld [vmem:[%s298_s1 + $0x18] sm:$0xff]  ;;  %v21_v5 = vld [vmem:[%s298_s1 + $0x10] sm:$0xff]  ;;  %vm34_vm0 = vcmask 523264   ;;  %s232_s10 = smov [#allocation2]  }
   0x7   :  { %174 = vmatpush3.msra.mxu0 %v24_v2  ;;  %201 = vmatpush3.msra.mxu1 %v24_v2  ;;  %v20_v6 = vld [vmem:[%s298_s1 + $0x8] sm:$0xff]  ;;  %v19_v7 = vld [vmem:[%s298_s1] sm:$0xff]  ;;  %v17_v9 = vld [vmem:[%s297_s0 + $0x10] sm:$0xff]  ;;  %s141_s11 = sshll.u32 %s232_s10, 4  ;;  %s142_s11 = int_to_ptr.vmem [resolvable:$true] %s141_s11 }
   0x8   :  { %175 = vmatprep.subr.mxu0 %v23_v3  ;;  %194 = vmatprep.subr.mxu1 %v23_v3  ;;  %v15_v8 = vld [vmem:[%s297_s0] sm:$0xff]  ;;  %v16_v10 = vld [vmem:[%s297_s0 + $0x8] sm:$0xff]  ;;  %v18_v11 = vld [vmem:[%s297_s0 + $0x18] sm:$0xff]  ;;  %s210_s0 = scalar_lea.vmem %s142_s11, 512  ;;  %p215_p1 = scmp.lt.s32.totalorder %s142_s11, %s142_s11 }
   0x9   :  { %176 = vmatpush3.msra.mxu0 %v23_v3  ;;  %202 = vmatpush3.msra.mxu1 %v23_v3  ;;  %v152_v12 = vld [vmem:[%s299_s2] ss:$0 sm:$0xff]  ;;  %p211_p0 = scmp.ne.s32.totalorder %s142_s11, %s210_s0  ;;  %p216_p2 = scmp.lt.s32.totalorder %s210_s0, %s210_s0 }
   0xa   :  { %177 = vmatprep.subr.mxu0 %v22_v4  ;;  %195 = vmatprep.subr.mxu1 %v22_v4 }
   0xb   :  { %178 = vmatpush3.msra.mxu0 %v22_v4  ;;  %203 = vmatpush3.msra.mxu1 %v22_v4  ;;  %p217_p3 = por %p216_p2, %p215_p1 }
   0xc   :  { %179 = vmatprep.subr.mxu0 %v21_v5  ;;  %196 = vmatprep.subr.mxu1 %v21_v5 }
   0xd   :  { %180 = vmatpush3.msra.mxu0 %v21_v5  ;;  %204 = vmatpush3.msra.mxu1 %v21_v5  ;;  %p218_p4 = pnand %p217_p3, %p211_p0 }
   0xe   :  { %181 = vmatprep.subr.mxu0 %v20_v6  ;;  %197 = vmatprep.subr.mxu1 %v20_v6 }
   0xf   :  { %182 = vmatpush3.msra.mxu0 %v20_v6  ;;  %205 = vmatpush3.msra.mxu1 %v20_v6 }
  0x10   :  { %183 = vmatprep.subr.mxu0 %v19_v7  ;;  %198 = vmatprep.subr.mxu1 %v19_v7 }
  0x11   :  { %184 = vmatpush3.msra.mxu0 %v19_v7  ;;  %206 = vmatpush3.msra.mxu1 %v19_v7 }
  0x12   :  { %185 = vmatprep.mubr.msk.f32.mxu0 %vm34_vm0, %v15_v8  ;;  %188 = vmatprep.mubr.msk.f32.mxu1 %vm34_vm0, %v17_v9 }
  0x13   :  { %186 = vmatmul.mubr.msk.f32.vlgmr.msra.gmra.mxu0 %vm34_vm0, %v16_v10  ;;  %189 = vmatmul.mubr.msk.f32.vlgmr.msra.gmra.mxu1 %vm34_vm0, %v18_v11 }
  0xd3   :  { %v187_v13 = vpop.f32.mrf.mxu0  ;;  %v190_v14 = vpop.f32.mrf.mxu1 }
  0xd4   :  { %v119_v15 = vadd.f32 %v187_v13, %v152_v12  ;;  %v129_v16 = vadd.f32 %v190_v14, %v152_v12 }
  0xd5   :  { %v113_v17 = vpop.f32.mrf.mxu0  ;;  %v123_v18 = vpop.f32.mrf.mxu1 }
  0xd6   :  { %133 = vst [vmem:[#allocation2 + $0x8] sm:$0xff] %v119_v15  ;;  %135 = vst [vmem:[#allocation2 + $0x18] sm:$0xff] %v129_v16  ;;  %v114_v19 = vadd.f32 %v152_v12, %v113_v17  ;;  %v124_v20 = vadd.f32 %v152_v12, %v123_v18 }
  0xd8   :  { %132 = vst [vmem:[#allocation2] sm:$0xff] %v114_v19  ;;  %134 = vst [vmem:[#allocation2 + $0x10] sm:$0xff] %v124_v20 }
  0xd9   :  { %221 = shalt.err (!%p218_p4)
}
  0xda   :  { %s233_s2 = smov 128   ;;  %s234_s12 = smov 8  }
  0xdb   :  { %147 = dma.vmem_to_hbm [thread:$0]  %s142_s11, 512, %s300_s3, [#allocation3], %s233_s2, %s233_s2, %s234_s12  }
  0xdc   :  { %230 = dma.done.wait [#allocation3], 512  }
  0xdd   :  { %231 = vsyncadd [#allocation3], 4294966784 }
  0xde   :  { %151 = vsyncpa [#allocation3], 1 }

</bundles_post_ra>
